<compile_context>
chip_gen: v5e
topology: v5e:2x2
jax: 0.10.0
libtpu: 0.0.40
codegen_flags: <defaults>
</compile_context>

<pallas_src>
import functools

import jax
import jax.numpy as jnp
from jax import lax
from jax.experimental import pallas as pl
from jax.experimental.pallas import tpu as pltpu

# Module constants (AuxNet's fc1 takes C2*4 inputs, which fixes the spatial
# pipeline: 14x14 -> conv3 -> 12x12 -> pool2 -> 6x6 -> conv3 -> 4x4 -> pool2 -> 2x2).
C1, C2 = 30, 60
K1 = 3 * 3 * 2          # conv1 im2col width, columns ordered (kh, kw, cin)
PH1 = PW1 = 6           # conv1 output after 2x2 max-pool
OH2 = OW2 = 4           # conv2 output (pre-pool)
PH2 = PW2 = 2           # conv2 output after 2x2 max-pool

_VMEM = pl.BlockSpec(memory_space=pltpu.MemorySpace.VMEM)


# ----------------------------------------------------------------------------
# Fused Pallas kernel
# ----------------------------------------------------------------------------
def _fused_auxnet_kernel(n, p1_ref, w1_ref, b1_ref, w2_ref, b2_ref,
                         wfc1_ref, bfc1_ref, wfc2_ref, bfc2_ref,
                         out_ref, y_ref, h1_scr, c2_scr):
    """Whole AuxNet forward for a batch of n (14x14x2) samples.

    p1:   (4*36n, 18)  stacked conv1 im2col patches: one 36n-row block per 2x2
                       pool offset; rows inside a block ordered (h, w, batch).
    w1:   (18, 30)     conv1 weights, rows (kh, kw, cin).      b1:   (1, 30)
    w2:   (9, 30, 60)  conv2 weights, leading dim = tap kh*3+kw. b2:  (1, 60)
    wfc1: (4, 60, 20)  fc1 weights split per spatial pos q=h*2+w (flatten
                       folded into the weights).               bfc1: (1, 20)
    wfc2: (20, 2)                                              bfc2: (1, 2)
    out:  (n, 2)   y: (n, 20)
    h1_scr: (36n, 30) VMEM scratch  (conv1+pool+relu, rows (h, w, batch))
    c2_scr: (16n, 60) VMEM scratch  (conv2 pre-pool, rows (oh, ow, batch))
    """
    m1 = PH1 * PW1 * n                                   # 36n pooled positions

    # ---- conv1: one stacked matmul, then max over the 4 pool-offset blocks ----
    c1 = jnp.dot(p1_ref[...], w1_ref[...], preferred_element_type=jnp.float32)
    pooled1 = jnp.maximum(jnp.maximum(c1[0 * m1:1 * m1, :], c1[1 * m1:2 * m1, :]),
                          jnp.maximum(c1[2 * m1:3 * m1, :], c1[3 * m1:4 * m1, :]))
    # max_j(p_j @ W) + b == max_j(p_j @ W + b): bias added once after the pool.
    h1_scr[...] = jnp.maximum(pooled1 + b1_ref[...], 0.0)

    # ---- conv2 (direct form): 9 tap matmuls over contiguous h1 row-slices ----
    # h1 row index = h*(PW1*n) + w*n + b ; conv2 output rows ordered (oh, ow, b).
    c2 = None
    for kh in range(3):
        for kw in range(3):
            rows = [h1_scr[pl.ds((oh + kh) * PW1 * n + kw * n, OW2 * n), :]
                    for oh in range(OH2)]
            blk = jnp.concatenate(rows, axis=0)          # (16n, 30)
            tap = jnp.dot(blk, w2_ref[kh * 3 + kw],
                          preferred_element_type=jnp.float32)   # (16n, 60)
            c2 = tap if c2 is None else c2 + tap
    c2_scr[...] = c2

    # ---- 2x2 max-pool + bias + relu, fc1 accumulated per spatial position ----
    acc = None
    for h2 in range(PH2):
        for w2 in range(PW2):
            q = h2 * PW2 + w2
            win = [c2_scr[pl.ds((2 * h2 + dh) * OW2 * n + (2 * w2 + dw) * n, n), :]
                   for dh in range(2) for dw in range(2)]
            pooled = jnp.maximum(jnp.maximum(win[0], win[1]),
                                 jnp.maximum(win[2], win[3]))    # (n, 60)
            hq = jnp.maximum(pooled + b2_ref[...], 0.0)
            contrib = jnp.dot(hq, wfc1_ref[q],
                              preferred_element_type=jnp.float32)  # (n, 20)
            acc = contrib if acc is None else acc + contrib

    y = acc + bfc1_ref[...]                                      # fc1 output
    y_ref[...] = y
    out_ref[...] = jnp.dot(jnp.maximum(y, 0.0), wfc2_ref[...],
                           preferred_element_type=jnp.float32) + bfc2_ref[...]


# ----------------------------------------------------------------------------
# Wrapper (minimal XLA glue + one pallas_call)
# ----------------------------------------------------------------------------
def _conv1_patches(x_nhwc):
    """Stacked conv1 im2col patch matrices (only wrapper-side glue needed)."""
    N, H, W, _ = x_nhwc.shape
    OH, OW = H - 2, W - 2
    PH, PW = OH // 2, OW // 2          # floor, as in PyTorch max_pool2d
    cols = jnp.concatenate(
        [x_nhwc[:, i:i + OH, j:j + OW, :] for i in range(3) for j in range(3)],
        axis=-1)                                            # (N, OH, OW, 18)
    blocks = []
    for dh in range(2):
        for dw in range(2):
            sel = cols[:, dh:2 * PH:2, dw:2 * PW:2, :]      # (N, PH, PW, 18)
            blocks.append(
                jnp.transpose(sel, (1, 2, 0, 3)).reshape(PH * PW * N, -1))
    return jnp.concatenate(blocks, axis=0)                  # (4*PH*PW*N, 18)


def auxnet_forward(x_nchw, kp):
    """Pallas implementation of AuxNet.forward (use_batch_norm=False)."""
    N = x_nchw.shape[0]
    x = jnp.transpose(x_nchw, (0, 2, 3, 1)).astype(jnp.float32)  # NCHW -> NHWC
    p1 = _conv1_patches(x)

    out, y = pl.pallas_call(
        functools.partial(_fused_auxnet_kernel, N),
        out_shape=(jax.ShapeDtypeStruct((N, 2), jnp.float32),
                   jax.ShapeDtypeStruct((N, 20), jnp.float32)),
        in_specs=[_VMEM] * 9,
        out_specs=(_VMEM, _VMEM),
        scratch_shapes=[pltpu.VMEM((PH1 * PW1 * N, C1), jnp.float32),
                        pltpu.VMEM((OH2 * OW2 * N, C2), jnp.float32)],
        # TODO(synk): for large batches, add a grid over the batch/M axis with
        # "parallel" dimension_semantics (v7x megacore) and tiled patch blocks.
    )(p1, kp["w1_mat"], kp["b1"], kp["w2_taps"], kp["b2"],
      kp["wfc1_q"], kp["bfc1"], kp["wfc2_mat"], kp["bfc2"])

    return out, y[:, :10], y[:, 10:]


# ----------------------------------------------------------------------------
# Deterministic parameter init (PyTorch layouts) + kernel-layout views
# ----------------------------------------------------------------------------
def init_params(key):
    ks = jax.random.split(key, 8)

    def nrm(k, shape, fan_in):
        return jax.random.normal(k, shape, jnp.float32) / jnp.sqrt(fan_in)

    pt = {  # PyTorch-shaped parameters (used by the XLA reference)
        "w1": nrm(ks[0], (C1, 2, 3, 3), 2 * 9),        # (Cout, Cin, kh, kw)
        "b1": nrm(ks[1], (C1,), 2 * 9),
        "w2": nrm(ks[2], (C2, C1, 3, 3), C1 * 9),
        "b2": nrm(ks[3], (C2,), C1 * 9),
        "wfc1": nrm(ks[4], (20, C2 * 4), C2 * 4),       # (out, in)
        "bfc1": nrm(ks[5], (20,), C2 * 4),
        "wfc2": nrm(ks[6], (2, 20), 20),
        "bfc2": nrm(ks[7], (2,), 20),
    }
    kp = {  # kernel-layout views (one-time init cost)
        "w1_mat": jnp.transpose(pt["w1"], (2, 3, 1, 0)).reshape(K1, C1),
        "b1": pt["b1"].reshape(1, C1),
        "w2_taps": jnp.transpose(pt["w2"], (2, 3, 1, 0)).reshape(9, C1, C2),
        "b2": pt["b2"].reshape(1, C2),
        # PyTorch view(-1, 240) flatten order is (c, h, w): feature = c*4 + q,
        # q = h*2 + w.  Fold the flatten into fc1 by splitting its weights per q.
        "wfc1_q": jnp.stack([pt["wfc1"][:, q::4].T for q in range(4)], axis=0),
        "bfc1": pt["bfc1"].reshape(1, 20),
        "wfc2_mat": pt["wfc2"].T,
        "bfc2": pt["bfc2"].reshape(1, 2),
    }
    return pt, kp


# ----------------------------------------------------------------------------
# Pure-XLA reference (mirrors the PyTorch forward exactly)
# ----------------------------------------------------------------------------
def reference_forward(x_nchw, pt):
    def conv(x, w, b):
        y = lax.conv_general_dilated(
            x, w, window_strides=(1, 1), padding="VALID",
            dimension_numbers=("NCHW", "OIHW", "NCHW"))
        return y + b[None, :, None, None]

    def pool2(x):
        return lax.reduce_window(x, -jnp.inf, lax.max,
                                 (1, 1, 2, 2), (1, 1, 2, 2), "VALID")

    x = jnp.maximum(pool2(conv(x_nchw, pt["w1"], pt["b1"])), 0.0)
    x = jnp.maximum(pool2(conv(x, pt["w2"], pt["b2"])), 0.0)
    flat = x.reshape(x.shape[0], -1)                 # NCHW flatten = (c, h, w)
    y = flat @ pt["wfc1"].T + pt["bfc1"]
    out = jnp.maximum(y, 0.0) @ pt["wfc2"].T + pt["bfc2"]
    return out, y[:, :10], y[:, 10:]


# ----------------------------------------------------------------------------
if __name__ == "__main__":
    key = jax.random.PRNGKey(0)
    k_x, k_p = jax.random.split(key)

    # AuxNet's fc1 (60*4 inputs) implies 14x14 two-channel image pairs.
    x = jax.random.normal(k_x, (2, 2, 14, 14), jnp.float32)
    pt_params, kern_params = init_params(k_p)

    fwd = jax.jit(lambda xx: auxnet_forward(xx, kern_params))
    out, aux_a, aux_b = fwd(x)
    jax.block_until_ready((out, aux_a, aux_b))

    ref_out, ref_a, ref_b = reference_forward(x, pt_params)
    ok = (out.shape == (2, 2) and aux_a.shape == (2, 10) and aux_b.shape == (2, 10)
          and jnp.allclose(out, ref_out, atol=1e-2, rtol=1e-2)
          and jnp.allclose(aux_a, ref_a, atol=1e-2, rtol=1e-2)
          and jnp.allclose(aux_b, ref_b, atol=1e-2, rtol=1e-2))
    print("KERNEL_OK" if ok else "MISMATCH")
</pallas_src>

<mosaic_0001>
module attributes {stable_mosaic.version = 11 : i64} {
  func.func @_fused_auxnet_kernel(%arg0: memref<288x18xf32, #tpu.memory_space<vmem>>, %arg1: memref<18x30xf32, #tpu.memory_space<vmem>>, %arg2: memref<1x30xf32, #tpu.memory_space<vmem>>, %arg3: memref<9x30x60xf32, #tpu.memory_space<vmem>>, %arg4: memref<1x60xf32, #tpu.memory_space<vmem>>, %arg5: memref<4x60x20xf32, #tpu.memory_space<vmem>>, %arg6: memref<1x20xf32, #tpu.memory_space<vmem>>, %arg7: memref<20x2xf32, #tpu.memory_space<vmem>>, %arg8: memref<1x2xf32, #tpu.memory_space<vmem>>, %arg9: memref<2x2xf32, #tpu.memory_space<vmem>>, %arg10: memref<2x20xf32, #tpu.memory_space<vmem>>, %arg11: memref<72x30xf32, #tpu.memory_space<vmem>>, %arg12: memref<32x60xf32, #tpu.memory_space<vmem>>) attributes {dimension_semantics = [], scalar_prefetch = 0 : i64, scratch_operands = 2 : i64, tpu.core_type = #tpu.core_type<tc>} {
    %c0 = arith.constant 0 : index
    %c0_0 = arith.constant 0 : index
    %0 = vector.load %arg0[%c0, %c0_0] : memref<288x18xf32, #tpu.memory_space<vmem>>, vector<288x18xf32>
    %c0_1 = arith.constant 0 : index
    %c0_2 = arith.constant 0 : index
    %1 = vector.load %arg1[%c0_1, %c0_2] : memref<18x30xf32, #tpu.memory_space<vmem>>, vector<18x30xf32>
    %cst = arith.constant dense<0.000000e+00> : vector<288x30xf32>
    %2 = tpu.matmul %0, %1, %cst {dimension_numbers = #tpu.dot_dimension_numbers<[1], [0], [0], [1], [0, 0, 1, 1], [], []>} : vector<288x18xf32>, vector<18x30xf32>, vector<288x30xf32> -> vector<288x30xf32>
    %3 = vector.extract_strided_slice %2 {offsets = [0, 0], sizes = [72, 30], strides = [1, 1]} : vector<288x30xf32> to vector<72x30xf32>
    %4 = vector.extract_strided_slice %2 {offsets = [72, 0], sizes = [72, 30], strides = [1, 1]} : vector<288x30xf32> to vector<72x30xf32>
    %5 = arith.maximumf %3, %4 : vector<72x30xf32>
    %6 = vector.extract_strided_slice %2 {offsets = [144, 0], sizes = [72, 30], strides = [1, 1]} : vector<288x30xf32> to vector<72x30xf32>
    %7 = vector.extract_strided_slice %2 {offsets = [216, 0], sizes = [72, 30], strides = [1, 1]} : vector<288x30xf32> to vector<72x30xf32>
    %8 = arith.maximumf %6, %7 : vector<72x30xf32>
    %9 = arith.maximumf %5, %8 : vector<72x30xf32>
    %c0_3 = arith.constant 0 : index
    %c0_4 = arith.constant 0 : index
    %10 = vector.load %arg2[%c0_3, %c0_4] : memref<1x30xf32, #tpu.memory_space<vmem>>, vector<1x30xf32>
    %11 = vector.broadcast %10 : vector<1x30xf32> to vector<72x30xf32>
    %12 = arith.addf %9, %11 : vector<72x30xf32>
    %cst_5 = arith.constant 0.000000e+00 : f32
    %13 = vector.broadcast %cst_5 : f32 to vector<72x30xf32>
    %14 = arith.maximumf %12, %13 : vector<72x30xf32>
    %c0_6 = arith.constant 0 : index
    %c0_7 = arith.constant 0 : index
    %15 = vector.load %arg11[%c0_6, %c0_7] : memref<72x30xf32, #tpu.memory_space<vmem>>, vector<72x30xf32>
    tpu.vector_store %arg11[%c0_6, %c0_7], %14 {strides = array<i32>} : memref<72x30xf32, #tpu.memory_space<vmem>>, vector<72x30xf32>,
    %c0_8 = arith.constant 0 : index
    %c0_9 = arith.constant 0 : index
    %16 = vector.load %arg11[%c0_8, %c0_9] : memref<72x30xf32, #tpu.memory_space<vmem>>, vector<8x30xf32>
    %c12 = arith.constant 12 : index
    %c0_10 = arith.constant 0 : index
    %17 = vector.load %arg11[%c12, %c0_10] : memref<72x30xf32, #tpu.memory_space<vmem>>, vector<8x30xf32>
    %c24 = arith.constant 24 : index
    %c0_11 = arith.constant 0 : index
    %18 = vector.load %arg11[%c24, %c0_11] : memref<72x30xf32, #tpu.memory_space<vmem>>, vector<8x30xf32>
    %c36 = arith.constant 36 : index
    %c0_12 = arith.constant 0 : index
    %19 = vector.load %arg11[%c36, %c0_12] : memref<72x30xf32, #tpu.memory_space<vmem>>, vector<8x30xf32>
    %20 = tpu.concatenate %16, %17, %18, %19 in 0 : vector<8x30xf32>, vector<8x30xf32>, vector<8x30xf32>, vector<8x30xf32> -> vector<32x30xf32>
    %c0_13 = arith.constant 0 : index
    %c0_14 = arith.constant 0 : index
    %c0_15 = arith.constant 0 : index
    %21 = vector.load %arg3[%c0_13, %c0_14, %c0_15] : memref<9x30x60xf32, #tpu.memory_space<vmem>>, vector<1x30x60xf32>
    %22 = vector.shape_cast %21 : vector<1x30x60xf32> to vector<30x60xf32>
    %cst_16 = arith.constant dense<0.000000e+00> : vector<32x60xf32>
    %23 = tpu.matmul %20, %22, %cst_16 {dimension_numbers = #tpu.dot_dimension_numbers<[1], [0], [0], [1], [0, 0, 1, 1], [], []>} : vector<32x30xf32>, vector<30x60xf32>, vector<32x60xf32> -> vector<32x60xf32>
    %c2 = arith.constant 2 : index
    %c0_17 = arith.constant 0 : index
    %24 = vector.load %arg11[%c2, %c0_17] : memref<72x30xf32, #tpu.memory_space<vmem>>, vector<8x30xf32>
    %c14 = arith.constant 14 : index
    %c0_18 = arith.constant 0 : index
    %25 = vector.load %arg11[%c14, %c0_18] : memref<72x30xf32, #tpu.memory_space<vmem>>, vector<8x30xf32>
    %c26 = arith.constant 26 : index
    %c0_19 = arith.constant 0 : index
    %26 = vector.load %arg11[%c26, %c0_19] : memref<72x30xf32, #tpu.memory_space<vmem>>, vector<8x30xf32>
    %c38 = arith.constant 38 : index
    %c0_20 = arith.constant 0 : index
    %27 = vector.load %arg11[%c38, %c0_20] : memref<72x30xf32, #tpu.memory_space<vmem>>, vector<8x30xf32>
    %28 = tpu.concatenate %24, %25, %26, %27 in 0 : vector<8x30xf32>, vector<8x30xf32>, vector<8x30xf32>, vector<8x30xf32> -> vector<32x30xf32>
    %c1 = arith.constant 1 : index
    %c0_21 = arith.constant 0 : index
    %c0_22 = arith.constant 0 : index
    %29 = vector.load %arg3[%c1, %c0_21, %c0_22] : memref<9x30x60xf32, #tpu.memory_space<vmem>>, vector<1x30x60xf32>
    %30 = vector.shape_cast %29 : vector<1x30x60xf32> to vector<30x60xf32>
    %cst_23 = arith.constant dense<0.000000e+00> : vector<32x60xf32>
    %31 = tpu.matmul %28, %30, %cst_23 {dimension_numbers = #tpu.dot_dimension_numbers<[1], [0], [0], [1], [0, 0, 1, 1], [], []>} : vector<32x30xf32>, vector<30x60xf32>, vector<32x60xf32> -> vector<32x60xf32>
    %32 = arith.addf %23, %31 : vector<32x60xf32>
    %c4 = arith.constant 4 : index
    %c0_24 = arith.constant 0 : index
    %33 = vector.load %arg11[%c4, %c0_24] : memref<72x30xf32, #tpu.memory_space<vmem>>, vector<8x30xf32>
    %c16 = arith.constant 16 : index
    %c0_25 = arith.constant 0 : index
    %34 = vector.load %arg11[%c16, %c0_25] : memref<72x30xf32, #tpu.memory_space<vmem>>, vector<8x30xf32>
    %c28 = arith.constant 28 : index
    %c0_26 = arith.constant 0 : index
    %35 = vector.load %arg11[%c28, %c0_26] : memref<72x30xf32, #tpu.memory_space<vmem>>, vector<8x30xf32>
    %c40 = arith.constant 40 : index
    %c0_27 = arith.constant 0 : index
    %36 = vector.load %arg11[%c40, %c0_27] : memref<72x30xf32, #tpu.memory_space<vmem>>, vector<8x30xf32>
    %37 = tpu.concatenate %33, %34, %35, %36 in 0 : vector<8x30xf32>, vector<8x30xf32>, vector<8x30xf32>, vector<8x30xf32> -> vector<32x30xf32>
    %c2_28 = arith.constant 2 : index
    %c0_29 = arith.constant 0 : index
    %c0_30 = arith.constant 0 : index
    %38 = vector.load %arg3[%c2_28, %c0_29, %c0_30] : memref<9x30x60xf32, #tpu.memory_space<vmem>>, vector<1x30x60xf32>
    %39 = vector.shape_cast %38 : vector<1x30x60xf32> to vector<30x60xf32>
    %cst_31 = arith.constant dense<0.000000e+00> : vector<32x60xf32>
    %40 = tpu.matmul %37, %39, %cst_31 {dimension_numbers = #tpu.dot_dimension_numbers<[1], [0], [0], [1], [0, 0, 1, 1], [], []>} : vector<32x30xf32>, vector<30x60xf32>, vector<32x60xf32> -> vector<32x60xf32>
    %41 = arith.addf %32, %40 : vector<32x60xf32>
    %c12_32 = arith.constant 12 : index
    %c0_33 = arith.constant 0 : index
    %42 = vector.load %arg11[%c12_32, %c0_33] : memref<72x30xf32, #tpu.memory_space<vmem>>, vector<8x30xf32>
    %c24_34 = arith.constant 24 : index
    %c0_35 = arith.constant 0 : index
    %43 = vector.load %arg11[%c24_34, %c0_35] : memref<72x30xf32, #tpu.memory_space<vmem>>, vector<8x30xf32>
    %c36_36 = arith.constant 36 : index
    %c0_37 = arith.constant 0 : index
    %44 = vector.load %arg11[%c36_36, %c0_37] : memref<72x30xf32, #tpu.memory_space<vmem>>, vector<8x30xf32>
    %c48 = arith.constant 48 : index
    %c0_38 = arith.constant 0 : index
    %45 = vector.load %arg11[%c48, %c0_38] : memref<72x30xf32, #tpu.memory_space<vmem>>, vector<8x30xf32>
    %46 = tpu.concatenate %42, %43, %44, %45 in 0 : vector<8x30xf32>, vector<8x30xf32>, vector<8x30xf32>, vector<8x30xf32> -> vector<32x30xf32>
    %c3 = arith.constant 3 : index
    %c0_39 = arith.constant 0 : index
    %c0_40 = arith.constant 0 : index
    %47 = vector.load %arg3[%c3, %c0_39, %c0_40] : memref<9x30x60xf32, #tpu.memory_space<vmem>>, vector<1x30x60xf32>
    %48 = vector.shape_cast %47 : vector<1x30x60xf32> to vector<30x60xf32>
    %cst_41 = arith.constant dense<0.000000e+00> : vector<32x60xf32>
    %49 = tpu.matmul %46, %48, %cst_41 {dimension_numbers = #tpu.dot_dimension_numbers<[1], [0], [0], [1], [0, 0, 1, 1], [], []>} : vector<32x30xf32>, vector<30x60xf32>, vector<32x60xf32> -> vector<32x60xf32>
    %50 = arith.addf %41, %49 : vector<32x60xf32>
    %c14_42 = arith.constant 14 : index
    %c0_43 = arith.constant 0 : index
    %51 = vector.load %arg11[%c14_42, %c0_43] : memref<72x30xf32, #tpu.memory_space<vmem>>, vector<8x30xf32>
    %c26_44 = arith.constant 26 : index
    %c0_45 = arith.constant 0 : index
    %52 = vector.load %arg11[%c26_44, %c0_45] : memref<72x30xf32, #tpu.memory_space<vmem>>, vector<8x30xf32>
    %c38_46 = arith.constant 38 : index
    %c0_47 = arith.constant 0 : index
    %53 = vector.load %arg11[%c38_46, %c0_47] : memref<72x30xf32, #tpu.memory_space<vmem>>, vector<8x30xf32>
    %c50 = arith.constant 50 : index
    %c0_48 = arith.constant 0 : index
    %54 = vector.load %arg11[%c50, %c0_48] : memref<72x30xf32, #tpu.memory_space<vmem>>, vector<8x30xf32>
    %55 = tpu.concatenate %51, %52, %53, %54 in 0 : vector<8x30xf32>, vector<8x30xf32>, vector<8x30xf32>, vector<8x30xf32> -> vector<32x30xf32>
    %c4_49 = arith.constant 4 : index
    %c0_50 = arith.constant 0 : index
    %c0_51 = arith.constant 0 : index
    %56 = vector.load %arg3[%c4_49, %c0_50, %c0_51] : memref<9x30x60xf32, #tpu.memory_space<vmem>>, vector<1x30x60xf32>
    %57 = vector.shape_cast %56 : vector<1x30x60xf32> to vector<30x60xf32>
    %cst_52 = arith.constant dense<0.000000e+00> : vector<32x60xf32>
    %58 = tpu.matmul %55, %57, %cst_52 {dimension_numbers = #tpu.dot_dimension_numbers<[1], [0], [0], [1], [0, 0, 1, 1], [], []>} : vector<32x30xf32>, vector<30x60xf32>, vector<32x60xf32> -> vector<32x60xf32>
    %59 = arith.addf %50, %58 : vector<32x60xf32>
    %c16_53 = arith.constant 16 : index
    %c0_54 = arith.constant 0 : index
    %60 = vector.load %arg11[%c16_53, %c0_54] : memref<72x30xf32, #tpu.memory_space<vmem>>, vector<8x30xf32>
    %c28_55 = arith.constant 28 : index
    %c0_56 = arith.constant 0 : index
    %61 = vector.load %arg11[%c28_55, %c0_56] : memref<72x30xf32, #tpu.memory_space<vmem>>, vector<8x30xf32>
    %c40_57 = arith.constant 40 : index
    %c0_58 = arith.constant 0 : index
    %62 = vector.load %arg11[%c40_57, %c0_58] : memref<72x30xf32, #tpu.memory_space<vmem>>, vector<8x30xf32>
    %c52 = arith.constant 52 : index
    %c0_59 = arith.constant 0 : index
    %63 = vector.load %arg11[%c52, %c0_59] : memref<72x30xf32, #tpu.memory_space<vmem>>, vector<8x30xf32>
    %64 = tpu.concatenate %60, %61, %62, %63 in 0 : vector<8x30xf32>, vector<8x30xf32>, vector<8x30xf32>, vector<8x30xf32> -> vector<32x30xf32>
    %c5 = arith.constant 5 : index
    %c0_60 = arith.constant 0 : index
    %c0_61 = arith.constant 0 : index
    %65 = vector.load %arg3[%c5, %c0_60, %c0_61] : memref<9x30x60xf32, #tpu.memory_space<vmem>>, vector<1x30x60xf32>
    %66 = vector.shape_cast %65 : vector<1x30x60xf32> to vector<30x60xf32>
    %cst_62 = arith.constant dense<0.000000e+00> : vector<32x60xf32>
    %67 = tpu.matmul %64, %66, %cst_62 {dimension_numbers = #tpu.dot_dimension_numbers<[1], [0], [0], [1], [0, 0, 1, 1], [], []>} : vector<32x30xf32>, vector<30x60xf32>, vector<32x60xf32> -> vector<32x60xf32>
    %68 = arith.addf %59, %67 : vector<32x60xf32>
    %c24_63 = arith.constant 24 : index
    %c0_64 = arith.constant 0 : index
    %69 = vector.load %arg11[%c24_63, %c0_64] : memref<72x30xf32, #tpu.memory_space<vmem>>, vector<8x30xf32>
    %c36_65 = arith.constant 36 : index
    %c0_66 = arith.constant 0 : index
    %70 = vector.load %arg11[%c36_65, %c0_66] : memref<72x30xf32, #tpu.memory_space<vmem>>, vector<8x30xf32>
    %c48_67 = arith.constant 48 : index
    %c0_68 = arith.constant 0 : index
    %71 = vector.load %arg11[%c48_67, %c0_68] : memref<72x30xf32, #tpu.memory_space<vmem>>, vector<8x30xf32>
    %c60 = arith.constant 60 : index
    %c0_69 = arith.constant 0 : index
    %72 = vector.load %arg11[%c60, %c0_69] : memref<72x30xf32, #tpu.memory_space<vmem>>, vector<8x30xf32>
    %73 = tpu.concatenate %69, %70, %71, %72 in 0 : vector<8x30xf32>, vector<8x30xf32>, vector<8x30xf32>, vector<8x30xf32> -> vector<32x30xf32>
    %c6 = arith.constant 6 : index
    %c0_70 = arith.constant 0 : index
    %c0_71 = arith.constant 0 : index
    %74 = vector.load %arg3[%c6, %c0_70, %c0_71] : memref<9x30x60xf32, #tpu.memory_space<vmem>>, vector<1x30x60xf32>
    %75 = vector.shape_cast %74 : vector<1x30x60xf32> to vector<30x60xf32>
    %cst_72 = arith.constant dense<0.000000e+00> : vector<32x60xf32>
    %76 = tpu.matmul %73, %75, %cst_72 {dimension_numbers = #tpu.dot_dimension_numbers<[1], [0], [0], [1], [0, 0, 1, 1], [], []>} : vector<32x30xf32>, vector<30x60xf32>, vector<32x60xf32> -> vector<32x60xf32>
    %77 = arith.addf %68, %76 : vector<32x60xf32>
    %c26_73 = arith.constant 26 : index
    %c0_74 = arith.constant 0 : index
    %78 = vector.load %arg11[%c26_73, %c0_74] : memref<72x30xf32, #tpu.memory_space<vmem>>, vector<8x30xf32>
    %c38_75 = arith.constant 38 : index
    %c0_76 = arith.constant 0 : index
    %79 = vector.load %arg11[%c38_75, %c0_76] : memref<72x30xf32, #tpu.memory_space<vmem>>, vector<8x30xf32>
    %c50_77 = arith.constant 50 : index
    %c0_78 = arith.constant 0 : index
    %80 = vector.load %arg11[%c50_77, %c0_78] : memref<72x30xf32, #tpu.memory_space<vmem>>, vector<8x30xf32>
    %c62 = arith.constant 62 : index
    %c0_79 = arith.constant 0 : index
    %81 = vector.load %arg11[%c62, %c0_79] : memref<72x30xf32, #tpu.memory_space<vmem>>, vector<8x30xf32>
    %82 = tpu.concatenate %78, %79, %80, %81 in 0 : vector<8x30xf32>, vector<8x30xf32>, vector<8x30xf32>, vector<8x30xf32> -> vector<32x30xf32>
    %c7 = arith.constant 7 : index
    %c0_80 = arith.constant 0 : index
    %c0_81 = arith.constant 0 : index
    %83 = vector.load %arg3[%c7, %c0_80, %c0_81] : memref<9x30x60xf32, #tpu.memory_space<vmem>>, vector<1x30x60xf32>
    %84 = vector.shape_cast %83 : vector<1x30x60xf32> to vector<30x60xf32>
    %cst_82 = arith.constant dense<0.000000e+00> : vector<32x60xf32>
    %85 = tpu.matmul %82, %84, %cst_82 {dimension_numbers = #tpu.dot_dimension_numbers<[1], [0], [0], [1], [0, 0, 1, 1], [], []>} : vector<32x30xf32>, vector<30x60xf32>, vector<32x60xf32> -> vector<32x60xf32>
    %86 = arith.addf %77, %85 : vector<32x60xf32>
    %c28_83 = arith.constant 28 : index
    %c0_84 = arith.constant 0 : index
    %87 = vector.load %arg11[%c28_83, %c0_84] : memref<72x30xf32, #tpu.memory_space<vmem>>, vector<8x30xf32>
    %c40_85 = arith.constant 40 : index
    %c0_86 = arith.constant 0 : index
    %88 = vector.load %arg11[%c40_85, %c0_86] : memref<72x30xf32, #tpu.memory_space<vmem>>, vector<8x30xf32>
    %c52_87 = arith.constant 52 : index
    %c0_88 = arith.constant 0 : index
    %89 = vector.load %arg11[%c52_87, %c0_88] : memref<72x30xf32, #tpu.memory_space<vmem>>, vector<8x30xf32>
    %c64 = arith.constant 64 : index
    %c0_89 = arith.constant 0 : index
    %90 = vector.load %arg11[%c64, %c0_89] : memref<72x30xf32, #tpu.memory_space<vmem>>, vector<8x30xf32>
    %91 = tpu.concatenate %87, %88, %89, %90 in 0 : vector<8x30xf32>, vector<8x30xf32>, vector<8x30xf32>, vector<8x30xf32> -> vector<32x30xf32>
    %c8 = arith.constant 8 : index
    %c0_90 = arith.constant 0 : index
    %c0_91 = arith.constant 0 : index
    %92 = vector.load %arg3[%c8, %c0_90, %c0_91] : memref<9x30x60xf32, #tpu.memory_space<vmem>>, vector<1x30x60xf32>
    %93 = vector.shape_cast %92 : vector<1x30x60xf32> to vector<30x60xf32>
    %cst_92 = arith.constant dense<0.000000e+00> : vector<32x60xf32>
    %94 = tpu.matmul %91, %93, %cst_92 {dimension_numbers = #tpu.dot_dimension_numbers<[1], [0], [0], [1], [0, 0, 1, 1], [], []>} : vector<32x30xf32>, vector<30x60xf32>, vector<32x60xf32> -> vector<32x60xf32>
    %95 = arith.addf %86, %94 : vector<32x60xf32>
    %c0_93 = arith.constant 0 : index
    %c0_94 = arith.constant 0 : index
    %96 = vector.load %arg12[%c0_93, %c0_94] : memref<32x60xf32, #tpu.memory_space<vmem>>, vector<32x60xf32>
    tpu.vector_store %arg12[%c0_93, %c0_94], %95 {strides = array<i32>} : memref<32x60xf32, #tpu.memory_space<vmem>>, vector<32x60xf32>,
    %c0_95 = arith.constant 0 : index
    %c0_96 = arith.constant 0 : index
    %97 = vector.load %arg12[%c0_95, %c0_96] : memref<32x60xf32, #tpu.memory_space<vmem>>, vector<2x60xf32>
    %c2_97 = arith.constant 2 : index
    %c0_98 = arith.constant 0 : index
    %98 = vector.load %arg12[%c2_97, %c0_98] : memref<32x60xf32, #tpu.memory_space<vmem>>, vector<2x60xf32>
    %c8_99 = arith.constant 8 : index
    %c0_100 = arith.constant 0 : index
    %99 = vector.load %arg12[%c8_99, %c0_100] : memref<32x60xf32, #tpu.memory_space<vmem>>, vector<2x60xf32>
    %c10 = arith.constant 10 : index
    %c0_101 = arith.constant 0 : index
    %100 = vector.load %arg12[%c10, %c0_101] : memref<32x60xf32, #tpu.memory_space<vmem>>, vector<2x60xf32>
    %101 = arith.maximumf %97, %98 : vector<2x60xf32>
    %102 = arith.maximumf %99, %100 : vector<2x60xf32>
    %103 = arith.maximumf %101, %102 : vector<2x60xf32>
    %c0_102 = arith.constant 0 : index
    %c0_103 = arith.constant 0 : index
    %104 = vector.load %arg4[%c0_102, %c0_103] : memref<1x60xf32, #tpu.memory_space<vmem>>, vector<1x60xf32>
    %105 = vector.broadcast %104 : vector<1x60xf32> to vector<2x60xf32>
    %106 = arith.addf %103, %105 : vector<2x60xf32>
    %cst_104 = arith.constant 0.000000e+00 : f32
    %107 = vector.broadcast %cst_104 : f32 to vector<2x60xf32>
    %108 = arith.maximumf %106, %107 : vector<2x60xf32>
    %c0_105 = arith.constant 0 : index
    %c0_106 = arith.constant 0 : index
    %c0_107 = arith.constant 0 : index
    %109 = vector.load %arg5[%c0_105, %c0_106, %c0_107] : memref<4x60x20xf32, #tpu.memory_space<vmem>>, vector<1x60x20xf32>
    %110 = vector.shape_cast %109 : vector<1x60x20xf32> to vector<60x20xf32>
    %cst_108 = arith.constant dense<0.000000e+00> : vector<2x20xf32>
    %111 = tpu.matmul %108, %110, %cst_108 {dimension_numbers = #tpu.dot_dimension_numbers<[1], [0], [0], [1], [0, 0, 1, 1], [], []>} : vector<2x60xf32>, vector<60x20xf32>, vector<2x20xf32> -> vector<2x20xf32>
    %c4_109 = arith.constant 4 : index
    %c0_110 = arith.constant 0 : index
    %112 = vector.load %arg12[%c4_109, %c0_110] : memref<32x60xf32, #tpu.memory_space<vmem>>, vector<2x60xf32>
    %c6_111 = arith.constant 6 : index
    %c0_112 = arith.constant 0 : index
    %113 = vector.load %arg12[%c6_111, %c0_112] : memref<32x60xf32, #tpu.memory_space<vmem>>, vector<2x60xf32>
    %c12_113 = arith.constant 12 : index
    %c0_114 = arith.constant 0 : index
    %114 = vector.load %arg12[%c12_113, %c0_114] : memref<32x60xf32, #tpu.memory_space<vmem>>, vector<2x60xf32>
    %c14_115 = arith.constant 14 : index
    %c0_116 = arith.constant 0 : index
    %115 = vector.load %arg12[%c14_115, %c0_116] : memref<32x60xf32, #tpu.memory_space<vmem>>, vector<2x60xf32>
    %116 = arith.maximumf %112, %113 : vector<2x60xf32>
    %117 = arith.maximumf %114, %115 : vector<2x60xf32>
    %118 = arith.maximumf %116, %117 : vector<2x60xf32>
    %c0_117 = arith.constant 0 : index
    %c0_118 = arith.constant 0 : index
    %119 = vector.load %arg4[%c0_117, %c0_118] : memref<1x60xf32, #tpu.memory_space<vmem>>, vector<1x60xf32>
    %120 = vector.broadcast %119 : vector<1x60xf32> to vector<2x60xf32>
    %121 = arith.addf %118, %120 : vector<2x60xf32>
    %cst_119 = arith.constant 0.000000e+00 : f32
    %122 = vector.broadcast %cst_119 : f32 to vector<2x60xf32>
    %123 = arith.maximumf %121, %122 : vector<2x60xf32>
    %c1_120 = arith.constant 1 : index
    %c0_121 = arith.constant 0 : index
    %c0_122 = arith.constant 0 : index
    %124 = vector.load %arg5[%c1_120, %c0_121, %c0_122] : memref<4x60x20xf32, #tpu.memory_space<vmem>>, vector<1x60x20xf32>
    %125 = vector.shape_cast %124 : vector<1x60x20xf32> to vector<60x20xf32>
    %cst_123 = arith.constant dense<0.000000e+00> : vector<2x20xf32>
    %126 = tpu.matmul %123, %125, %cst_123 {dimension_numbers = #tpu.dot_dimension_numbers<[1], [0], [0], [1], [0, 0, 1, 1], [], []>} : vector<2x60xf32>, vector<60x20xf32>, vector<2x20xf32> -> vector<2x20xf32>
    %127 = arith.addf %111, %126 : vector<2x20xf32>
    %c16_124 = arith.constant 16 : index
    %c0_125 = arith.constant 0 : index
    %128 = vector.load %arg12[%c16_124, %c0_125] : memref<32x60xf32, #tpu.memory_space<vmem>>, vector<2x60xf32>
    %c18 = arith.constant 18 : index
    %c0_126 = arith.constant 0 : index
    %129 = vector.load %arg12[%c18, %c0_126] : memref<32x60xf32, #tpu.memory_space<vmem>>, vector<2x60xf32>
    %c24_127 = arith.constant 24 : index
    %c0_128 = arith.constant 0 : index
    %130 = vector.load %arg12[%c24_127, %c0_128] : memref<32x60xf32, #tpu.memory_space<vmem>>, vector<2x60xf32>
    %c26_129 = arith.constant 26 : index
    %c0_130 = arith.constant 0 : index
    %131 = vector.load %arg12[%c26_129, %c0_130] : memref<32x60xf32, #tpu.memory_space<vmem>>, vector<2x60xf32>
    %132 = arith.maximumf %128, %129 : vector<2x60xf32>
    %133 = arith.maximumf %130, %131 : vector<2x60xf32>
    %134 = arith.maximumf %132, %133 : vector<2x60xf32>
    %c0_131 = arith.constant 0 : index
    %c0_132 = arith.constant 0 : index
    %135 = vector.load %arg4[%c0_131, %c0_132] : memref<1x60xf32, #tpu.memory_space<vmem>>, vector<1x60xf32>
    %136 = vector.broadcast %135 : vector<1x60xf32> to vector<2x60xf32>
    %137 = arith.addf %134, %136 : vector<2x60xf32>
    %cst_133 = arith.constant 0.000000e+00 : f32
    %138 = vector.broadcast %cst_133 : f32 to vector<2x60xf32>
    %139 = arith.maximumf %137, %138 : vector<2x60xf32>
    %c2_134 = arith.constant 2 : index
    %c0_135 = arith.constant 0 : index
    %c0_136 = arith.constant 0 : index
    %140 = vector.load %arg5[%c2_134, %c0_135, %c0_136] : memref<4x60x20xf32, #tpu.memory_space<vmem>>, vector<1x60x20xf32>
    %141 = vector.shape_cast %140 : vector<1x60x20xf32> to vector<60x20xf32>
    %cst_137 = arith.constant dense<0.000000e+00> : vector<2x20xf32>
    %142 = tpu.matmul %139, %141, %cst_137 {dimension_numbers = #tpu.dot_dimension_numbers<[1], [0], [0], [1], [0, 0, 1, 1], [], []>} : vector<2x60xf32>, vector<60x20xf32>, vector<2x20xf32> -> vector<2x20xf32>
    %143 = arith.addf %127, %142 : vector<2x20xf32>
    %c20 = arith.constant 20 : index
    %c0_138 = arith.constant 0 : index
    %144 = vector.load %arg12[%c20, %c0_138] : memref<32x60xf32, #tpu.memory_space<vmem>>, vector<2x60xf32>
    %c22 = arith.constant 22 : index
    %c0_139 = arith.constant 0 : index
    %145 = vector.load %arg12[%c22, %c0_139] : memref<32x60xf32, #tpu.memory_space<vmem>>, vector<2x60xf32>
    %c28_140 = arith.constant 28 : index
    %c0_141 = arith.constant 0 : index
    %146 = vector.load %arg12[%c28_140, %c0_141] : memref<32x60xf32, #tpu.memory_space<vmem>>, vector<2x60xf32>
    %c30 = arith.constant 30 : index
    %c0_142 = arith.constant 0 : index
    %147 = vector.load %arg12[%c30, %c0_142] : memref<32x60xf32, #tpu.memory_space<vmem>>, vector<2x60xf32>
    %148 = arith.maximumf %144, %145 : vector<2x60xf32>
    %149 = arith.maximumf %146, %147 : vector<2x60xf32>
    %150 = arith.maximumf %148, %149 : vector<2x60xf32>
    %c0_143 = arith.constant 0 : index
    %c0_144 = arith.constant 0 : index
    %151 = vector.load %arg4[%c0_143, %c0_144] : memref<1x60xf32, #tpu.memory_space<vmem>>, vector<1x60xf32>
    %152 = vector.broadcast %151 : vector<1x60xf32> to vector<2x60xf32>
    %153 = arith.addf %150, %152 : vector<2x60xf32>
    %cst_145 = arith.constant 0.000000e+00 : f32
    %154 = vector.broadcast %cst_145 : f32 to vector<2x60xf32>
    %155 = arith.maximumf %153, %154 : vector<2x60xf32>
    %c3_146 = arith.constant 3 : index
    %c0_147 = arith.constant 0 : index
    %c0_148 = arith.constant 0 : index
    %156 = vector.load %arg5[%c3_146, %c0_147, %c0_148] : memref<4x60x20xf32, #tpu.memory_space<vmem>>, vector<1x60x20xf32>
    %157 = vector.shape_cast %156 : vector<1x60x20xf32> to vector<60x20xf32>
    %cst_149 = arith.constant dense<0.000000e+00> : vector<2x20xf32>
    %158 = tpu.matmul %155, %157, %cst_149 {dimension_numbers = #tpu.dot_dimension_numbers<[1], [0], [0], [1], [0, 0, 1, 1], [], []>} : vector<2x60xf32>, vector<60x20xf32>, vector<2x20xf32> -> vector<2x20xf32>
    %159 = arith.addf %143, %158 : vector<2x20xf32>
    %c0_150 = arith.constant 0 : index
    %c0_151 = arith.constant 0 : index
    %160 = vector.load %arg6[%c0_150, %c0_151] : memref<1x20xf32, #tpu.memory_space<vmem>>, vector<1x20xf32>
    %161 = vector.broadcast %160 : vector<1x20xf32> to vector<2x20xf32>
    %162 = arith.addf %159, %161 : vector<2x20xf32>
    %c0_152 = arith.constant 0 : index
    %c0_153 = arith.constant 0 : index
    %163 = vector.load %arg10[%c0_152, %c0_153] : memref<2x20xf32, #tpu.memory_space<vmem>>, vector<2x20xf32>
    tpu.vector_store %arg10[%c0_152, %c0_153], %162 {strides = array<i32>} : memref<2x20xf32, #tpu.memory_space<vmem>>, vector<2x20xf32>,
    %cst_154 = arith.constant 0.000000e+00 : f32
    %164 = vector.broadcast %cst_154 : f32 to vector<2x20xf32>
    %165 = arith.maximumf %162, %164 : vector<2x20xf32>
    %c0_155 = arith.constant 0 : index
    %c0_156 = arith.constant 0 : index
    %166 = vector.load %arg7[%c0_155, %c0_156] : memref<20x2xf32, #tpu.memory_space<vmem>>, vector<20x2xf32>
    %cst_157 = arith.constant dense<0.000000e+00> : vector<2x2xf32>
    %167 = tpu.matmul %165, %166, %cst_157 {dimension_numbers = #tpu.dot_dimension_numbers<[1], [0], [0], [1], [0, 0, 1, 1], [], []>} : vector<2x20xf32>, vector<20x2xf32>, vector<2x2xf32> -> vector<2x2xf32>
    %c0_158 = arith.constant 0 : index
    %c0_159 = arith.constant 0 : index
    %168 = vector.load %arg8[%c0_158, %c0_159] : memref<1x2xf32, #tpu.memory_space<vmem>>, vector<1x2xf32>
    %169 = vector.broadcast %168 : vector<1x2xf32> to vector<2x2xf32>
    %170 = arith.addf %167, %169 : vector<2x2xf32>
    %c0_160 = arith.constant 0 : index
    %c0_161 = arith.constant 0 : index
    %171 = vector.load %arg9[%c0_160, %c0_161] : memref<2x2xf32, #tpu.memory_space<vmem>>, vector<2x2xf32>
    tpu.vector_store %arg9[%c0_160, %c0_161], %170 {strides = array<i32>} : memref<2x2xf32, #tpu.memory_space<vmem>>, vector<2x2xf32>,
    return
  }
}

</mosaic_0001>

<bundles_post_ra>
// kernel: _lambda_.1
= control target key start
LH: loop header
LB: loop body
LE: loop exit
PB: predicated region body
PF: predicated region fallthrough
CT: control target
= control target key end

     0   :  { %vm183_vm0 = vcmask 1041408   ;;  %vm74_vm1 = vcmask 146432   ;;  %s1818_s0 = inlined_call_operand.vmem [shape: f32[288,18], index: 0, kind: input, shape index: {}]   ;;  %s1819_s1 = inlined_call_operand.vmem [shape: f32[18,30], index: 1, kind: input, shape index: {}]   ;;  %s1820_s2 = inlined_call_operand.vmem [shape: f32[1,30], index: 2, kind: input, shape index: {}]   ;;  %s1821_s3 = inlined_call_operand.vmem [shape: f32[9,30,60], index: 3, kind: input, shape index: {}]   ;;  %s1822_s4 = inlined_call_operand.vmem [shape: f32[1,60], index: 4, kind: input, shape index: {}]   ;;  %s1823_s5 = inlined_call_operand.vmem [shape: f32[4,60,20], index: 5, kind: input, shape index: {}]   ;;  %s1824_s6 = inlined_call_operand.vmem [shape: f32[1,20], index: 6, kind: input, shape index: {}]   ;;  %s1825_s7 = inlined_call_operand.vmem [shape: f32[20,2], index: 7, kind: input, shape index: {}]   ;;  %s1826_s8 = inlined_call_operand.vmem [shape: f32[1,2], index: 8, kind: input, shape index: {}]   ;;  %s1827_s9 = inlined_call_operand.hbm [shape: f32[2,2], index: 9, kind: output, shape index: {0}]   ;;  %s1828_s10 = inlined_call_operand.vmem [shape: f32[2,20], index: 10, kind: output, shape index: {1}]  }
   0x1   :  { %v73_v0 = vld [vmem:[%s1819_s1 + $0x10] sm:$0x3]  ;;  %v72_v1 = vld [vmem:[%s1819_s1 + $0x8] sm:$0xff]  ;;  %v71_v2 = vld [vmem:[%s1819_s1] sm:$0xff] }
   0x2   :  { %1055 = vmatpush.msk.msra.mxu0 %vm183_vm0, %v73_v0  ;;  %1203 = vmatpush.msk.msra.mxu2 %vm183_vm0, %v73_v0  ;;  %v35_v3 = vld [vmem:[%s1818_s0] sm:$0xff] }
   0x3   :  { %1204 = vmatpush.msk.msra.mxu3 %vm183_vm0, %v73_v0 }
   0x4   :  { %201 = vmatpush.msra.mxu0 %v72_v1  ;;  %1205 = vmatpush.msra.mxu2 %v72_v1 }
   0x5   :  { %1206 = vmatpush.msra.mxu3 %v72_v1 }
   0x6   :  { %16 = vsyncpa [#allocation5], 0  ;;  %202 = vmatpush.msra.mxu0 %v71_v2  ;;  %1207 = vmatpush.msra.mxu2 %v71_v2  ;;  %v36_v4 = vld [vmem:[%s1818_s0 + $0x8] sm:$0xff]  ;;  %v37_v5 = vld [vmem:[%s1818_s0 + $0x10] sm:$0xff]  ;;  %vm361_vm2 = vcmask 244736   ;;  %vm400_vm3 = vcmask 1045504  }
   0x7   :  { %1056 = vmatmul.msk.f32.vlgmr.msra.gmra.mxu0 %vm74_vm1, %v35_v3  ;;  %1208 = vmatpush.msra.mxu3 %v71_v2  ;;  %v38_v6 = vld [vmem:[%s1818_s0 + $0x18] sm:$0xff]  ;;  %v39_v7 = vld [vmem:[%s1818_s0 + $0x20] sm:$0xff]  ;;  %v40_v8 = vld [vmem:[%s1818_s0 + $0x28] sm:$0xff]  ;;  %vm851_vm4 = vcmask 1043456   ;;  %vm804_vm5 = vcmask 490496   ;;  %vm996_vm6 = vcmask 156672  }
   0x8   :  { %v41_v9 = vld [vmem:[%s1818_s0 + $0x30] sm:$0xff]  ;;  %v55_v10 = vld [vmem:[%s1818_s0 + $0xa0] sm:$0xff]  ;;  %v64_v11 = vld [vmem:[%s1818_s0 + $0xe8] sm:$0xff]  ;;  %vm1006_vm7 = vcmask 162816   ;;  %s1240_s12 = smov [#allocation4]   ;;  %vm1033_vm8 = vcmask 9216  }
   0x9   :  { %1076 = vmatmul.msk.f32.vlgmr.msra.gmra.mxu2 %vm74_vm1, %v55_v10  ;;  %1085 = vmatmul.msk.f32.vlgmr.msra.gmra.mxu3 %vm74_vm1, %v64_v11  ;;  %v42_v12 = vld [vmem:[%s1818_s0 + $0x38] sm:$0xff]  ;;  %v56_v13 = vld [vmem:[%s1818_s0 + $0xa8] sm:$0xff]  ;;  %v65_v14 = vld [vmem:[%s1818_s0 + $0xf0] sm:$0xff]  ;;  %s1040_s13 = sshll.u32 %s1240_s12, 4  ;;  %s1041_s13 = int_to_ptr.vmem [resolvable:$true] %s1040_s13 }
   0xa   :  { %v43_v15 = vld [vmem:[%s1818_s0 + $0x40] sm:$0xff]  ;;  %v57_v16 = vld [vmem:[%s1818_s0 + $0xb0] sm:$0xff]  ;;  %v66_v17 = vld [vmem:[%s1818_s0 + $0xf8] sm:$0xff] }
   0xb   :  { %v44_v18 = vld [vmem:[%s1818_s0 + $0x48] sm:$0xff]  ;;  %v58_v19 = vld [vmem:[%s1818_s0 + $0xb8] sm:$0xff]  ;;  %v67_v20 = vld [vmem:[%s1818_s0 + $0x100] sm:$0xff] }
   0xc   :  { %v45_v21 = vld [vmem:[%s1818_s0 + $0x50] sm:$0xff]  ;;  %v59_v22 = vld [vmem:[%s1818_s0 + $0xc0] sm:$0xff]  ;;  %v68_v23 = vld [vmem:[%s1818_s0 + $0x108] sm:$0xff] }
   0xd   :  { %v46_v24 = vld [vmem:[%s1818_s0 + $0x58] sm:$0xff]  ;;  %v60_v25 = vld [vmem:[%s1818_s0 + $0xc8] sm:$0xff]  ;;  %v69_v26 = vld [vmem:[%s1818_s0 + $0x110] sm:$0xff] }
   0xe   :  { %v47_v27 = vld [vmem:[%s1818_s0 + $0x60] sm:$0xff]  ;;  %v61_v28 = vld [vmem:[%s1818_s0 + $0xd0] sm:$0xff]  ;;  %v70_v29 = vld [vmem:[%s1818_s0 + $0x118] sm:$0xff] }
   0xf   :  { %1057 = vmatmul.msk.f32.gmra.mxu0 %vm74_vm1, %v36_v4  ;;  %v48_v30 = vld [vmem:[%s1818_s0 + $0x68] sm:$0xff]  ;;  %v62_v31 = vld [vmem:[%s1818_s0 + $0xd8] sm:$0xff]  ;;  %v49_v32 = vld [vmem:[%s1818_s0 + $0x70] sm:$0xff] }
  0x10   :  { %v63_v33 = vld [vmem:[%s1818_s0 + $0xe0] sm:$0xff]  ;;  %v50_v34 = vld [vmem:[%s1818_s0 + $0x78] sm:$0xff]  ;;  %v52_v38 = vld [vmem:[%s1818_s0 + $0x88] sm:$0xff] }
  0x11   :  { %1077 = vmatmul.msk.f32.gmra.mxu2 %vm74_vm1, %v56_v13  ;;  %1086 = vmatmul.msk.f32.gmra.mxu3 %vm74_vm1, %v65_v14  ;;  %v51_v36 = vld [vmem:[%s1818_s0 + $0x80] sm:$0xff]  ;;  %v53_v40 = vld [vmem:[%s1818_s0 + $0x90] sm:$0xff]  ;;  %v54_v42 = vld [vmem:[%s1818_s0 + $0x98] sm:$0xff] }
  0x12   :  { %v1464_v57 = vld [vmem:[%s1820_s2] ss:$0 sm:$0xff] }
  0x17   :  { %1058 = vmatmul.msk.f32.gmra.mxu0 %vm74_vm1, %v37_v5 }
  0x19   :  { %1078 = vmatmul.msk.f32.gmra.mxu2 %vm74_vm1, %v57_v16  ;;  %1087 = vmatmul.msk.f32.gmra.mxu3 %vm74_vm1, %v66_v17 }
  0x1f   :  { %1059 = vmatmul.msk.f32.gmra.mxu0 %vm74_vm1, %v38_v6 }
  0x21   :  { %1079 = vmatmul.msk.f32.gmra.mxu2 %vm74_vm1, %v58_v19  ;;  %1088 = vmatmul.msk.f32.gmra.mxu3 %vm74_vm1, %v67_v20 }
  0x27   :  { %1060 = vmatmul.msk.f32.gmra.mxu0 %vm74_vm1, %v39_v7 }
  0x29   :  { %1080 = vmatmul.msk.f32.gmra.mxu2 %vm74_vm1, %v59_v22  ;;  %1089 = vmatmul.msk.f32.gmra.mxu3 %vm74_vm1, %v68_v23 }
  0x2f   :  { %1061 = vmatmul.msk.f32.gmra.mxu0 %vm74_vm1, %v40_v8 }
  0x31   :  { %1081 = vmatmul.msk.f32.gmra.mxu2 %vm74_vm1, %v60_v25  ;;  %1090 = vmatmul.msk.f32.gmra.mxu3 %vm74_vm1, %v69_v26 }
  0x37   :  { %1062 = vmatmul.msk.f32.gmra.mxu0 %vm74_vm1, %v41_v9 }
  0x39   :  { %1082 = vmatmul.msk.f32.gmra.mxu2 %vm74_vm1, %v61_v28  ;;  %1091 = vmatmul.msk.f32.gmra.mxu3 %vm74_vm1, %v70_v29 }
  0x3f   :  { %1063 = vmatmul.msk.f32.gmra.mxu0 %vm74_vm1, %v42_v12 }
  0x41   :  { %1083 = vmatmul.msk.f32.gmra.mxu2 %vm74_vm1, %v62_v31 }
  0x47   :  { %1064 = vmatmul.msk.f32.gmra.mxu0 %vm74_vm1, %v43_v15 }
  0x49   :  { %1084 = vmatmul.msk.f32.gmra.mxu2 %vm74_vm1, %v63_v33  ;;  %v1108_v33 = vld [vmem:[%s1821_s3 + $0x50] sm:$0xff] }
  0x4f   :  { %1065 = vmatmul.msk.f32.gmra.mxu0 %vm74_vm1, %v44_v18  ;;  %v1109_v18 = vld [vmem:[%s1821_s3 + $0x58] sm:$0x3f] }
  0x50   :  { %1110 = vmatpush.msk.msrb.mxu3 %vm400_vm3, %v1109_v18 }
  0x52   :  { %514 = vmatpush.msrb.mxu3 %v1108_v33  ;;  %v1160_v33 = vld [vmem:[%s1821_s3 + $0x100] sm:$0xff] }
  0x57   :  { %1066 = vmatmul.msk.f32.gmra.mxu0 %vm74_vm1, %v45_v21 }
  0x5f   :  { %1067 = vmatmul.msk.f32.gmra.mxu0 %vm74_vm1, %v46_v24 }
  0x67   :  { %1068 = vmatmul.msk.f32.gmra.mxu0 %vm74_vm1, %v47_v27 }
  0x6f   :  { %1069 = vmatmul.msk.f32.gmra.mxu0 %vm74_vm1, %v48_v30 }
  0x77   :  { %1070 = vmatmul.msk.f32.gmra.mxu0 %vm74_vm1, %v49_v32 }
  0x7f   :  { %1071 = vmatmul.msk.f32.gmra.mxu0 %vm74_vm1, %v50_v34  ;;  %v1127_v34 = vld [vmem:[%s1821_s3 + $0x98] sm:$0x3f] }
  0x80   :  { %1128 = vmatpush.msk.msrb.mxu2 %vm400_vm3, %v1127_v34 }
  0x84   :  { %v1433_v35 = vpop.f32.mrf.mxu0 }
  0x87   :  { %1072 = vmatmul.msk.f32.gmra.mxu0 %vm74_vm1, %v51_v36  ;;  %v1095_v36 = vld [vmem:[%s1821_s3 + $0x38] sm:$0x3f] }
  0x88   :  { %1096 = vmatpush.msk.msra.mxu1 %vm400_vm3, %v1095_v36  ;;  %v1145_v36 = vld [vmem:[%s1821_s3 + $0xd8] sm:$0x3f] }
  0x8c   :  { %v1439_v37 = vpop.f32.mrf.mxu0  ;;  %v264_v48 = vpop.f32.mrf.mxu2 }
  0x8d   :  { %v291_v50 = vpop.f32.mrf.mxu3 }
  0x8e   :  { %v323_v54 = vmax.f32 %v264_v48, %v291_v50  ;;  %v1124_v50 = vld [vmem:[%s1821_s3 + $0x80] sm:$0xff] }
  0x8f   :  { %1073 = vmatmul.msk.f32.gmra.mxu0 %vm74_vm1, %v52_v38 }
  0x94   :  { %v210_v39 = vpop.f32.mrf.mxu0  ;;  %v267_v52 = vpop.f32.mrf.mxu2 }
  0x95   :  { %v294_v53 = vpop.f32.mrf.mxu3 }
  0x96   :  { %v324_v63 = vmax.f32 %v267_v52, %v294_v53  ;;  %v1092_v52 = vld [vmem:[%s1821_s3 + $0x20] sm:$0xff] }
  0x97   :  { %1074 = vmatmul.msk.f32.gmra.mxu0 %vm74_vm1, %v53_v40  ;;  %v1126_v40 = vld [vmem:[%s1821_s3 + $0x90] sm:$0xff] }
  0x98   :  { %604 = vmatpush.msrb.mxu2 %v1126_v40 }
  0x9c   :  { %v213_v41 = vpop.f32.mrf.mxu0  ;;  %v270_v58 = vpop.f32.mrf.mxu2 }
  0x9d   :  { %v297_v60 = vpop.f32.mrf.mxu3 }
  0x9e   :  { %v325_v7 = vmax.f32 %v270_v58, %v297_v60  ;;  %v378_v58 = vld [vmem:[%s1821_s3 + $0x18] sm:$0x3f] }
  0x9f   :  { %1075 = vmatmul.msk.f32.gmra.mxu0 %vm74_vm1, %v54_v42  ;;  %v1107_v42 = vld [vmem:[%s1821_s3 + $0x48] sm:$0xff] }
  0xa0   :  { %515 = vmatpush.msrb.mxu3 %v1107_v42 }
  0xa4   :  { %v216_v43 = vpop.f32.mrf.mxu0  ;;  %v273_v3 = vpop.f32.mrf.mxu2 }
  0xa5   :  { %v300_v5 = vpop.f32.mrf.mxu3 }
  0xa6   :  { %v326_v14 = vmax.f32 %v273_v3, %v300_v5 }
  0xac   :  { %v219_v44 = vpop.f32.mrf.mxu0  ;;  %v276_v12 = vpop.f32.mrf.mxu2 }
  0xad   :  { %v303_v16 = vpop.f32.mrf.mxu3 }
  0xae   :  { %v327_v22 = vmax.f32 %v276_v12, %v303_v16  ;;  %v1153_v12 = vld [vmem:[%s1821_s3 + $0xf0] sm:$0xff]  ;;  %v1151_v16 = vld [vmem:[%s1821_s3 + $0xe0] sm:$0xff] }
  0xb4   :  { %v222_v45 = vpop.f32.mrf.mxu0  ;;  %v279_v24 = vpop.f32.mrf.mxu2 }
  0xb5   :  { %v306_v26 = vpop.f32.mrf.mxu3 }
  0xb6   :  { %v328_v30 = vmax.f32 %v279_v24, %v306_v26  ;;  %v1116_v26 = vld [vmem:[%s1821_s3 + $0x68] sm:$0xff] }
  0xbc   :  { %v1453_v46 = vpop.f32.mrf.mxu0  ;;  %v282_v38 = vpop.f32.mrf.mxu2 }
  0xc4   :  { %v1455_v47 = vpop.f32.mrf.mxu0  ;;  %v285_v60 = vpop.f32.mrf.mxu2 }
  0xcc   :  { %v1457_v49 = vpop.f32.mrf.mxu0 }
  0xd4   :  { %v1459_v51 = vpop.f32.mrf.mxu0 }
  0xdc   :  { %v237_v55 = vpop.f32.mrf.mxu0 }
  0xdd   :  { %v314_v56 = vmax.f32 %v210_v39, %v237_v55  ;;  %v1094_v39 = vld [vmem:[%s1821_s3 + $0x30] sm:$0xff] }
  0xde   :  { %417 = vmatpush.msra.mxu1 %v1094_v39  ;;  %v1144_v39 = vld [vmem:[%s1821_s3 + $0xd0] sm:$0xff] }
  0xdf   :  { %v332_v59 = vmax.f32 %v314_v56, %v323_v54 }
  0xe1   :  { %v345_v61 = vadd.f32 %v1464_v57, %v332_v59 }
  0xe3   :  { %v354_v62 = vmax.f32 %v345_v61, 0.0 }
  0xe4   :  { %v240_v0 = vpop.f32.mrf.mxu0 }
  0xe5   :  { %364 = vst.msk [vmem:[#allocation2 + $0x10] sm:$0xff] %vm361_vm2, %v354_v62  ;;  %v315_v1 = vmax.f32 %v213_v41, %v240_v0  ;;  %v312_v0 = vmax.f32 %v1433_v35, %v1457_v49  ;;  %v376_v49 = vld [vmem:[%s1821_s3 + $0x8] sm:$0xff] }
  0xe7   :  { %v333_v2 = vmax.f32 %v315_v1, %v324_v63 }
  0xe9   :  { %v346_v4 = vadd.f32 %v1464_v57, %v333_v2 }
  0xeb   :  { %v355_v6 = vmax.f32 %v346_v4, 0.0  ;;  %v288_v4 = vpop.f32.mrf.mxu2 }
  0xec   :  { %v243_v8 = vpop.f32.mrf.mxu0 }
  0xed   :  { %365 = vst.msk [vmem:[#allocation2 + $0x18] sm:$0xff] %vm361_vm2, %v355_v6  ;;  %v316_v9 = vmax.f32 %v216_v43, %v243_v8  ;;  %v1125_v43 = vld [vmem:[%s1821_s3 + $0x88] sm:$0xff] }
  0xee   :  { %605 = vmatpush.msrb.mxu2 %v1125_v43 }
  0xef   :  { %v334_v10 = vmax.f32 %v316_v9, %v325_v7  ;;  %v313_v7 = vmax.f32 %v1439_v37, %v1459_v51  ;;  %v1136_v37 = vld [vmem:[%s1821_s3 + $0xb8] sm:$0x3f] }
  0xf0   :  { %606 = vmatpush.msrb.mxu2 %v1124_v50  ;;  %v1154_v51 = vld [vmem:[%s1821_s3 + $0xf8] sm:$0x3f] }
  0xf1   :  { %v347_v11 = vadd.f32 %v1464_v57, %v334_v10 }
  0xf2   :  { %1155 = vmatpush.msk.msra.mxu2 %vm400_vm3, %v1154_v51  ;;  %v1175_v51 = vld [vmem:[%s1823_s5 + $0x70] sm:$0xff] }
  0xf3   :  { %v356_v13 = vmax.f32 %v347_v11, 0.0  ;;  %v375_v11 = vld [vmem:[%s1821_s3] sm:$0xff] }
  0xf4   :  { %v246_v15 = vpop.f32.mrf.mxu0  ;;  %739 = vmatpush.msra.mxu2 %v1153_v12  ;;  %v373_v40 = vld [vmem:[#allocation2 + $0x18] sm:$0xff]  ;;  %v1174_v12 = vld [vmem:[%s1823_s5 + $0x68] sm:$0xff] }
  0xf5   :  { %366 = vst.msk [vmem:[#allocation2 + $0x20] sm:$0xff] %vm361_vm2, %v356_v13  ;;  %v317_v17 = vmax.f32 %v219_v44, %v246_v15  ;;  %v309_v44 = vpop.f32.mrf.mxu3  ;;  %v1134_v13 = vld [vmem:[%s1821_s3 + $0xa8] sm:$0xff]  ;;  %v1133_v15 = vld [vmem:[%s1821_s3 + $0xa0] sm:$0xff] }
  0xf6   :  { %v329_v54 = vmax.f32 %v282_v38, %v309_v44 }
  0xf7   :  { %v335_v19 = vmax.f32 %v317_v17, %v326_v14  ;;  %v1152_v14 = vld [vmem:[%s1821_s3 + $0xe8] sm:$0xff] }
  0xf8   :  { %740 = vmatpush.msra.mxu2 %v1152_v14 }
  0xf9   :  { %v348_v20 = vadd.f32 %v1464_v57, %v335_v19 }
  0xfa   :  { %741 = vmatpush.msra.mxu2 %v1151_v16  ;;  %v826_v16 = vld [vmem:[%s1823_s5 + $0x20] sm:$0xff] }
  0xfb   :  { %v357_v21 = vmax.f32 %v348_v20, 0.0  ;;  %v1118_v20 = vld [vmem:[%s1821_s3 + $0x78] sm:$0x3f] }
  0xfc   :  { %v249_v23 = vpop.f32.mrf.mxu0  ;;  %v479_v24 = vld [vmem:[#allocation2 + $0x1c] sm:$0xff] }
  0xfd   :  { %367 = vst.msk [vmem:[#allocation2 + $0x28] sm:$0xff] %vm361_vm2, %v357_v21  ;;  %v318_v25 = vmax.f32 %v222_v45, %v249_v23  ;;  %v1093_v45 = vld [vmem:[%s1821_s3 + $0x28] sm:$0xff]  ;;  %v478_v21 = vld [vmem:[#allocation2 + $0x10] sm:$0xff] }
  0xfe   :  { %418 = vmatpush.msra.mxu1 %v1093_v45  ;;  %v1117_v23 = vld [vmem:[%s1821_s3 + $0x70] sm:$0xff]  ;;  %v1142_v45 = vld [vmem:[%s1821_s3 + $0xc0] sm:$0xff] }
  0xff   :  { %v336_v27 = vmax.f32 %v318_v25, %v327_v22  ;;  %v381_v22 = vld [vmem:[#allocation2 + $0x1a] sm:$0xff] }
 0x100   :  { %419 = vmatpush.msra.mxu1 %v1092_v52 }
 0x101   :  { %v349_v28 = vadd.f32 %v1464_v57, %v336_v27 }
 0x102   :  { %1101 = vmatpush.msk.msrb.mxu1 %vm400_vm3, %v378_v58 }
 0x103   :  { %v358_v29 = vmax.f32 %v349_v28, 0.0 }
 0x104   :  { %v252_v31 = vpop.f32.mrf.mxu0  ;;  %v382_v25 = vld [vmem:[#allocation2 + $0x26] sm:$0xff] }
 0x105   :  { %368 = vst.msk [vmem:[#allocation2 + $0x30] sm:$0xff] %vm361_vm2, %v358_v29  ;;  %v319_v32 = vmax.f32 %v1453_v46, %v252_v31  ;;  %v1106_v46 = vld [vmem:[%s1821_s3 + $0x40] sm:$0xff]  ;;  %v480_v27 = vld [vmem:[#allocation2 + $0x28] sm:$0xff]  ;;  %v1162_v31 = vld [vmem:[%s1821_s3 + $0x110] sm:$0xff] }
 0x106   :  { %516 = vmatpush.msrb.mxu3 %v1106_v46  ;;  %v1115_v29 = vld [vmem:[%s1821_s3 + $0x60] sm:$0xff] }
 0x107   :  { %v337_v41 = vmax.f32 %v319_v32, %v328_v30  ;;  %v1163_v30 = vld [vmem:[%s1821_s3 + $0x118] sm:$0x3f]  ;;  %v1161_v32 = vld [vmem:[%s1821_s3 + $0x108] sm:$0xff] }
 0x108   :  { %1137 = vmatpush.msk.msra.mxu3 %vm400_vm3, %v1136_v37  ;;  %v374_v42 = vld [vmem:[#allocation2 + $0x24] sm:$0xff]  ;;  %v828_v37 = vld [vmem:[%s1823_s5 + $0x30] sm:$0xff] }
 0x109   :  { %v350_v48 = vadd.f32 %v1464_v57, %v337_v41  ;;  %v1143_v41 = vld [vmem:[%s1821_s3 + $0xc8] sm:$0xff] }
 0x10b   :  { %v359_v53 = vmax.f32 %v350_v48, 0.0 }
 0x10c   :  { %v255_v55 = vpop.f32.mrf.mxu0  ;;  %v534_v46 = vld [vmem:[#allocation2 + $0x30] sm:$0xff] }
 0x10d   :  { %369 = vst.msk [vmem:[#allocation2 + $0x38] sm:$0xff] %vm361_vm2, %v359_v53  ;;  %v320_v56 = vmax.f32 %v1455_v47, %v255_v55  ;;  %v377_v47 = vld [vmem:[%s1821_s3 + $0x10] sm:$0xff] }
 0x10e   :  { %461 = vmatpush.msrb.mxu1 %v377_v47 }
 0x10f   :  { %v338_v59 = vmax.f32 %v320_v56, %v329_v54 }
 0x110   :  { %462 = vmatpush.msrb.mxu1 %v376_v49  ;;  %v1176_v49 = vld [vmem:[%s1823_s5 + $0x78] sm:$0xf] }
 0x111   :  { %v351_v61 = vadd.f32 %v1464_v57, %v338_v59 }
 0x112   :  { %463 = vmatpush.msrb.mxu1 %v375_v11 }
 0x113   :  { %v360_v62 = vmax.f32 %v351_v61, 0.0 }
 0x114   :  { %v258_v63 = vpop.f32.mrf.mxu0  ;;  %v579_v28 = vld [vmem:[#allocation2 + $0x32] sm:$0xff] }
 0x115   :  { %370 = vst.msk [vmem:[#allocation2 + $0x40] sm:$0xff] %vm361_vm2, %v360_v62  ;;  %v321_v1 = vmax.f32 %v258_v63, %v285_v60  ;;  %v624_v43 = vld [vmem:[#allocation2 + $0x34] sm:$0xff] }
 0x117   :  { %v330_v2 = vmax.f32 %v312_v0, %v321_v1 }
 0x119   :  { %v343_v3 = vadd.f32 %v1464_v57, %v330_v2 }
 0x11b   :  { %v352_v5 = vmax.f32 %v343_v3, 0.0 }
 0x11c   :  { %v261_v6 = vpop.f32.mrf.mxu0  ;;  %v714_v44 = vld [vmem:[#allocation2 + $0x3e] sm:$0xff] }
 0x11d   :  { %362 = vst.msk [vmem:[#allocation2] sm:$0xff] %vm361_vm2, %v352_v5  ;;  %v322_v35 = vmax.f32 %v261_v6, %v288_v4  ;;  %v759_v48 = vld [vmem:[#allocation2 + $0x40] sm:$0xff] }
 0x11e   :  { %v669_v50 = vld [vmem:[#allocation2 + $0x3c] sm:$0xff] }
 0x11f   :  { %v331_v8 = vmax.f32 %v313_v7, %v322_v35  ;;  %v829_v35 = vld [vmem:[%s1823_s5 + $0x38] sm:$0xf] }
 0x121   :  { %v344_v9 = vadd.f32 %v1464_v57, %v331_v8  ;;  %v1135_v57 = vld [vmem:[%s1821_s3 + $0xb0] sm:$0xff] }
 0x122   :  { %649 = vmatpush.msra.mxu3 %v1135_v57 }
 0x123   :  { %v353_v10 = vmax.f32 %v344_v9, 0.0  ;;  %v1188_v9 = vld [vmem:[%s1823_s5 + $0xb8] sm:$0xf] }
 0x124   :  { %650 = vmatpush.msra.mxu3 %v1134_v13  ;;  %v371_v34 = vld [vmem:[#allocation2] sm:$0xff]  ;;  %v827_v13 = vld [vmem:[%s1823_s5 + $0x28] sm:$0xff] }
 0x125   :  { %363 = vst.msk [vmem:[#allocation2 + $0x8] sm:$0xff] %vm361_vm2, %v353_v10 }
 0x126   :  { %651 = vmatpush.msra.mxu3 %v1133_v15  ;;  %v1173_v15 = vld [vmem:[%s1823_s5 + $0x60] sm:$0xff] }
 0x12c   :  { %v379_v17 = vld [vmem:[#allocation2 + $0x2] sm:$0xff]  ;;  %v380_v19 = vld [vmem:[#allocation2 + $0xe] sm:$0xff] }
 0x12d   :  { %v477_v18 = vld [vmem:[#allocation2 + $0x4] sm:$0xff]  ;;  %1097 = vmatmul.msk.f32.vlgmr.msra.gmra.mxu1 %vm361_vm2, %v379_v17  ;;  %1129 = vmatmul.msk.f32.vlgmr.msrb.gmra.mxu2 %vm361_vm2, %v380_v19  ;;  %v372_v38 = vld [vmem:[#allocation2 + $0xc] sm:$0xff] }
 0x12e   :  { %1111 = vmatmul.msk.f32.vlgmr.msrb.gmra.mxu3 %vm361_vm2, %v477_v18  ;;  %1119 = vmatpush.msk.msra.mxu1 %vm400_vm3, %v1118_v20  ;;  %v1187_v18 = vld [vmem:[%s1823_s5 + $0xb0] sm:$0xff] }
 0x12f   :  { %1164 = vmatpush.msk.msrb.mxu3 %vm400_vm3, %v1163_v30  ;;  %1179 = vmatpush.msk.msrb.mxu2 %vm851_vm4, %v829_v35  ;;  %v1192_v35 = vld [vmem:[%s1823_s5 + $0xc8] sm:$0xff] }
 0x130   :  { %559 = vmatpush.msra.mxu1 %v1117_v23 }
 0x131   :  { %784 = vmatpush.msrb.mxu3 %v1162_v31  ;;  %890 = vmatpush.msrb.mxu2 %v828_v37 }
 0x132   :  { %560 = vmatpush.msra.mxu1 %v1116_v26 }
 0x133   :  { %785 = vmatpush.msrb.mxu3 %v1161_v32  ;;  %891 = vmatpush.msrb.mxu2 %v827_v13  ;;  %v1169_v32 = vld [vmem:[%s1823_s5 + $0x40] sm:$0xff] }
 0x134   :  { %561 = vmatpush.msra.mxu1 %v1115_v29  ;;  %v823_v29 = vld [vmem:[%s1823_s5 + $0x8] sm:$0xff] }
 0x135   :  { %1098 = vmatmul.msk.f32.gmra.mxu1 %vm361_vm2, %v380_v19  ;;  %1130 = vmatmul.msk.f32.gmra.mxu2 %vm361_vm2, %v381_v22  ;;  %v1186_v19 = vld [vmem:[%s1823_s5 + $0xa8] sm:$0xff] }
 0x136   :  { %1112 = vmatmul.msk.f32.gmra.mxu3 %vm361_vm2, %v478_v21  ;;  %892 = vmatpush.msrb.mxu2 %v826_v16 }
 0x137   :  { %786 = vmatpush.msrb.mxu3 %v1160_v33  ;;  %v822_v33 = vld [vmem:[%s1823_s5] sm:$0xff] }
 0x13d   :  { %1099 = vmatmul.msk.f32.gmra.mxu1 %vm361_vm2, %v381_v22  ;;  %1131 = vmatmul.msk.f32.gmra.mxu2 %vm361_vm2, %v382_v25 }
 0x13e   :  { %1113 = vmatmul.msk.f32.gmra.mxu3 %vm361_vm2, %v479_v24 }
 0x145   :  { %1100 = vmatmul.msk.f32.gmra.mxu1 %vm361_vm2, %v382_v25  ;;  %1132 = vmatmul.msk.f32.gmra.mxu2 %vm361_vm2, %v579_v28 }
 0x146   :  { %1114 = vmatmul.msk.f32.gmra.mxu3 %vm361_vm2, %v480_v27 }
 0x14d   :  { %1102 = vmatmul.msk.f32.vlgmr.msrb.gmra.mxu1 %vm361_vm2, %v371_v34  ;;  %1156 = vmatmul.msk.f32.vlgmr.msra.gmra.mxu2 %vm361_vm2, %v381_v22  ;;  %v825_v22 = vld [vmem:[%s1823_s5 + $0x18] sm:$0xff] }
 0x14e   :  { %1138 = vmatmul.msk.f32.vlgmr.msra.gmra.mxu3 %vm361_vm2, %v478_v21  ;;  %1146 = vmatpush.msk.msrb.mxu1 %vm400_vm3, %v1145_v36  ;;  %v1172_v21 = vld [vmem:[%s1823_s5 + $0x58] sm:$0xff] }
 0x14f   :  { %1189 = vmatpush.msk.msra.mxu3 %vm851_vm4, %v1188_v9  ;;  %893 = vmatpush.msrb.mxu2 %v825_v22  ;;  %v1211_v22 = vld [vmem:[%s1822_s4] ss:$0 sm:$0xff] }
 0x150   :  { %694 = vmatpush.msrb.mxu1 %v1144_v39 }
 0x151   :  { %934 = vmatpush.msra.mxu3 %v1187_v18 }
 0x152   :  { %695 = vmatpush.msrb.mxu1 %v1143_v41  ;;  %v1198_v41 = vld [vmem:[%s1823_s5 + $0xf8] sm:$0xf] }
 0x153   :  { %935 = vmatpush.msra.mxu3 %v1186_v19 }
 0x154   :  { %696 = vmatpush.msrb.mxu1 %v1142_v45  ;;  %v1183_v45 = vld [vmem:[%s1823_s5 + $0x90] sm:$0xff] }
 0x155   :  { %1103 = vmatmul.msk.f32.gmra.mxu1 %vm361_vm2, %v372_v38  ;;  %1157 = vmatmul.msk.f32.gmra.mxu2 %vm361_vm2, %v382_v25  ;;  %v824_v25 = vld [vmem:[%s1823_s5 + $0x10] sm:$0xff] }
 0x156   :  { %1139 = vmatmul.msk.f32.gmra.mxu3 %vm361_vm2, %v479_v24  ;;  %894 = vmatpush.msrb.mxu2 %v824_v25 }
 0x158   :  { %895 = vmatpush.msrb.mxu2 %v823_v29 }
 0x15a   :  { %896 = vmatpush.msrb.mxu2 %v822_v33 }
 0x15d   :  { %1104 = vmatmul.msk.f32.gmra.mxu1 %vm361_vm2, %v373_v40  ;;  %1158 = vmatmul.msk.f32.gmra.mxu2 %vm361_vm2, %v579_v28  ;;  %v1170_v28 = vld [vmem:[%s1823_s5 + $0x48] sm:$0xff] }
 0x15e   :  { %1140 = vmatmul.msk.f32.gmra.mxu3 %vm361_vm2, %v480_v27 }
 0x165   :  { %1105 = vmatmul.msk.f32.gmra.mxu1 %vm361_vm2, %v374_v42  ;;  %1159 = vmatmul.msk.f32.gmra.mxu2 %vm361_vm2, %v714_v44 }
 0x166   :  { %1141 = vmatmul.msk.f32.gmra.mxu3 %vm361_vm2, %v624_v43 }
 0x16d   :  { %1120 = vmatmul.msk.f32.vlgmr.msra.gmra.mxu1 %vm361_vm2, %v372_v38  ;;  %v1185_v38 = vld [vmem:[%s1823_s5 + $0xa0] sm:$0xff] }
 0x16e   :  { %1165 = vmatmul.msk.f32.vlgmr.msrb.gmra.mxu3 %vm361_vm2, %v479_v24  ;;  %1177 = vmatpush.msk.msra.mxu1 %vm851_vm4, %v1176_v49  ;;  %v1171_v24 = vld [vmem:[%s1823_s5 + $0x50] sm:$0xff] }
 0x16f   :  { %936 = vmatpush.msra.mxu3 %v1185_v38 }
 0x170   :  { %864 = vmatpush.msra.mxu1 %v1175_v51 }
 0x172   :  { %865 = vmatpush.msra.mxu1 %v1174_v12 }
 0x174   :  { %866 = vmatpush.msra.mxu1 %v1173_v15 }
 0x175   :  { %1121 = vmatmul.msk.f32.gmra.mxu1 %vm361_vm2, %v373_v40 }
 0x176   :  { %1166 = vmatmul.msk.f32.gmra.mxu3 %vm361_vm2, %v480_v27  ;;  %867 = vmatpush.msra.mxu1 %v1172_v21 }
 0x178   :  { %868 = vmatpush.msra.mxu1 %v1171_v24 }
 0x17a   :  { %869 = vmatpush.msra.mxu1 %v1170_v28 }
 0x17c   :  { %870 = vmatpush.msra.mxu1 %v1169_v32 }
 0x17d   :  { %1122 = vmatmul.msk.f32.gmra.mxu1 %vm361_vm2, %v374_v42 }
 0x17e   :  { %1167 = vmatmul.msk.f32.gmra.mxu3 %vm361_vm2, %v624_v43 }
 0x185   :  { %1123 = vmatmul.msk.f32.gmra.mxu1 %vm361_vm2, %v534_v46 }
 0x186   :  { %1168 = vmatmul.msk.f32.gmra.mxu3 %vm361_vm2, %v759_v48 }
 0x18d   :  { %1147 = vmatmul.msk.f32.vlgmr.msrb.gmra.mxu1 %vm361_vm2, %v373_v40  ;;  %v1184_v40 = vld [vmem:[%s1823_s5 + $0x98] sm:$0xff] }
 0x18e   :  { %1199 = vmatpush.msk.msrb.mxu1 %vm851_vm4, %v1198_v41  ;;  %937 = vmatpush.msra.mxu3 %v1184_v40 }
 0x190   :  { %938 = vmatpush.msra.mxu3 %v1183_v45 }
 0x195   :  { %1148 = vmatmul.msk.f32.gmra.mxu1 %vm361_vm2, %v374_v42  ;;  %v1197_v42 = vld [vmem:[%s1823_s5 + $0xf0] sm:$0xff] }
 0x196   :  { %979 = vmatpush.msrb.mxu1 %v1197_v42 }
 0x19d   :  { %1149 = vmatmul.msk.f32.gmra.mxu1 %vm361_vm2, %v534_v46  ;;  %v1196_v46 = vld [vmem:[%s1823_s5 + $0xe8] sm:$0xff] }
 0x19e   :  { %980 = vmatpush.msrb.mxu1 %v1196_v46 }
 0x1a5   :  { %1150 = vmatmul.msk.f32.gmra.mxu1 %vm361_vm2, %v669_v50 }
 0x1aa   :  { %v421_v52 = vpop.f32.mrf.mxu1 }
 0x1b0   :  { %v608_v0 = vpop.f32.mrf.mxu2 }
 0x1b1   :  { %v518_v54 = vpop.f32.mrf.mxu3 }
 0x1b2   :  { %v424_v53 = vpop.f32.mrf.mxu1 }
 0x1b8   :  { %v1655_v2 = vpop.f32.mrf.mxu2 }
 0x1b9   :  { %v521_v56 = vpop.f32.mrf.mxu3 }
 0x1ba   :  { %v1643_v55 = vpop.f32.mrf.mxu1 }
 0x1c0   :  { %v1659_v5 = vpop.f32.mrf.mxu2 }
 0x1c1   :  { %v1647_v60 = vpop.f32.mrf.mxu3 }
 0x1c2   :  { %v1645_v58 = vpop.f32.mrf.mxu1 }
 0x1c8   :  { %v1677_v11 = vpop.f32.mrf.mxu2 }
 0x1c9   :  { %v1649_v62 = vpop.f32.mrf.mxu3 }
 0x1ca   :  { %v465_v59 = vpop.f32.mrf.mxu1 }
 0x1cb   :  { %v466_v10 = vadd.f32 %v465_v59, %v421_v52  ;;  %v1182_v52 = vld [vmem:[%s1823_s5 + $0x88] sm:$0xff] }
 0x1cc   :  { %939 = vmatpush.msra.mxu3 %v1182_v52 }
 0x1cd   :  { %v530_v14 = vadd.f32 %v518_v54, %v466_v10 }
 0x1d0   :  { %v743_v27 = vpop.f32.mrf.mxu2 }
 0x1d1   :  { %v653_v1 = vpop.f32.mrf.mxu3 }
 0x1d2   :  { %v468_v61 = vpop.f32.mrf.mxu1 }
 0x1d3   :  { %v469_v23 = vadd.f32 %v468_v61, %v424_v53  ;;  %v1195_v53 = vld [vmem:[%s1823_s5 + $0xe0] sm:$0xff]  ;;  %v1194_v61 = vld [vmem:[%s1823_s5 + $0xd8] sm:$0xff] }
 0x1d4   :  { %981 = vmatpush.msrb.mxu1 %v1195_v53 }
 0x1d5   :  { %v531_v30 = vadd.f32 %v521_v56, %v469_v23  ;;  %v1181_v56 = vld [vmem:[%s1823_s5 + $0x80] sm:$0xff] }
 0x1d6   :  { %940 = vmatpush.msra.mxu3 %v1181_v56  ;;  %982 = vmatpush.msrb.mxu1 %v1194_v61 }
 0x1d8   :  { %v746_v59 = vpop.f32.mrf.mxu2 }
 0x1d9   :  { %v1657_v3 = vpop.f32.mrf.mxu3 }
 0x1da   :  { %v1651_v63 = vpop.f32.mrf.mxu1 }
 0x1db   :  { %v472_v43 = vadd.f32 %v1651_v63, %v1643_v55 }
 0x1dd   :  { %v532_v54 = vadd.f32 %v1647_v60, %v472_v43 }
 0x1e0   :  { %v749_v37 = vpop.f32.mrf.mxu2 }
 0x1e1   :  { %v1661_v7 = vpop.f32.mrf.mxu3 }
 0x1e2   :  { %v1653_v47 = vpop.f32.mrf.mxu1 }
 0x1e9   :  { %v1685_v57 = vpop.f32.mrf.mxu3 }
 0x1ea   :  { %v563_v4 = vpop.f32.mrf.mxu1 }
 0x1eb   :  { %v575_v17 = vadd.f32 %v563_v4, %v530_v14  ;;  %v475_v4 = vadd.f32 %v1653_v47, %v1645_v58 }
 0x1ed   :  { %v620_v26 = vadd.f32 %v608_v0, %v575_v17  ;;  %v533_v9 = vadd.f32 %v1649_v62, %v475_v4 }
 0x1ef   :  { %v665_v36 = vadd.f32 %v653_v1, %v620_v26 }
 0x1f1   :  { %v788_v31 = vpop.f32.mrf.mxu3 }
 0x1f2   :  { %v566_v6 = vpop.f32.mrf.mxu1 }
 0x1f3   :  { %v576_v34 = vadd.f32 %v566_v6, %v531_v30  ;;  %v752_v30 = vpop.f32.mrf.mxu2 }
 0x1f5   :  { %v621_v48 = vadd.f32 %v1655_v2, %v576_v34  ;;  %v1193_v2 = vld [vmem:[%s1823_s5 + $0xd0] sm:$0xff] }
 0x1f6   :  { %983 = vmatpush.msrb.mxu1 %v1193_v2  ;;  %v999_v2 = vld [vmem:[%s1825_s7] sm:$0xff] }
 0x1f7   :  { %v666_v0 = vadd.f32 %v1657_v3, %v621_v48 }
 0x1f8   :  { %984 = vmatpush.msrb.mxu1 %v1192_v35 }
 0x1f9   :  { %v791_v60 = vpop.f32.mrf.mxu3 }
 0x1fa   :  { %v1669_v8 = vpop.f32.mrf.mxu1 }
 0x1fb   :  { %v577_v63 = vadd.f32 %v1669_v8, %v532_v54  ;;  %v1191_v8 = vld [vmem:[%s1823_s5 + $0xc0] sm:$0xff] }
 0x1fc   :  { %985 = vmatpush.msrb.mxu1 %v1191_v8  ;;  %v1212_v8 = vld [vmem:[%s1824_s6] ss:$0 sm:$0xff]  ;;  %s1042_s6 = sshll.u32 %s1827_s9, 4  ;;  %s1043_s6 = int_to_ptr.hbm [resolvable:$true] %s1042_s6 }
 0x1fd   :  { %v622_v49 = vadd.f32 %v1659_v5, %v577_v63 }
 0x1ff   :  { %v667_v47 = vadd.f32 %v1661_v7, %v622_v49 }
 0x201   :  { %v794_v12 = vpop.f32.mrf.mxu3 }
 0x202   :  { %v1705_v20 = vpop.f32.mrf.mxu1 }
 0x203   :  { %v578_v58 = vadd.f32 %v1705_v20, %v533_v9 }
 0x205   :  { %v623_v13 = vadd.f32 %v1677_v11, %v578_v58 }
 0x207   :  { %v668_v7 = vadd.f32 %v1685_v57, %v623_v13 }
 0x209   :  { %v797_v34 = vpop.f32.mrf.mxu3 }
 0x20a   :  { %v698_v39 = vpop.f32.mrf.mxu1 }
 0x20b   :  { %v710_v44 = vadd.f32 %v698_v39, %v665_v36 }
 0x20d   :  { %v755_v50 = vadd.f32 %v743_v27, %v710_v44 }
 0x20f   :  { %v800_v55 = vadd.f32 %v788_v31, %v755_v50 }
 0x211   :  { %805 = vst.msk [vmem:[#allocation3] sm:$0xff] %vm804_vm5, %v800_v55 }
 0x212   :  { %v701_v1 = vpop.f32.mrf.mxu1 }
 0x213   :  { %v711_v6 = vadd.f32 %v701_v1, %v666_v0  ;;  %v1000_v1 = vld [vmem:[%s1825_s7 + $0x8] sm:$0xff] }
 0x215   :  { %v756_v3 = vadd.f32 %v746_v59, %v711_v6 }
 0x217   :  { %v801_v10 = vadd.f32 %v791_v60, %v756_v3  ;;  %v1001_v60 = vld [vmem:[%s1825_s7 + $0x10] sm:$0xf] }
 0x218   :  { %v830_v15 = vld [vmem:[#allocation3 + $0x4] sm:$0x3]  ;;  %v831_v16 = vld [vmem:[#allocation3 + $0x6] sm:$0x3]  ;;  %v809_v62 = vld [vmem:[#allocation3] sm:$0x3]  ;;  %1201 = vmatpush.msk.msra.mxu2 %vm851_vm4, %v1001_v60 }
 0x219   :  { %806 = vst.msk [vmem:[#allocation3 + $0x8] sm:$0xff] %vm804_vm5, %v801_v10  ;;  %v810_v18 = vld [vmem:[#allocation3 + $0x2] sm:$0x3]  ;;  %v834_v23 = vmax.f32 %v830_v15, %v831_v16 }
 0x21a   :  { %v704_v51 = vpop.f32.mrf.mxu1  ;;  %v813_v26 = vmax.f32 %v809_v62, %v810_v18  ;;  %1027 = vmatpush.msra.mxu2 %v1000_v1 }
 0x21b   :  { %v712_v5 = vadd.f32 %v704_v51, %v667_v47 }
 0x21c   :  { %1028 = vmatpush.msra.mxu2 %v999_v2 }
 0x21d   :  { %v757_v14 = vadd.f32 %v749_v37, %v712_v5  ;;  %v1213_v37 = vld [vmem:[%s1826_s8] ss:$0 sm:$0xff] }
 0x21f   :  { %v802_v17 = vadd.f32 %v794_v12, %v757_v14 }
 0x220   :  { %v832_v19 = vld [vmem:[#allocation3 + $0xc] sm:$0x3]  ;;  %v833_v21 = vld [vmem:[#allocation3 + $0xe] sm:$0x3]  ;;  %v811_v20 = vld [vmem:[#allocation3 + $0x8] sm:$0x3] }
 0x221   :  { %807 = vst.msk [vmem:[#allocation3 + $0x10] sm:$0xff] %vm804_vm5, %v802_v17  ;;  %v835_v24 = vmax.f32 %v832_v19, %v833_v21  ;;  %v812_v11 = vld [vmem:[#allocation3 + $0xa] sm:$0x3] }
 0x222   :  { %v707_v25 = vpop.f32.mrf.mxu1  ;;  %v814_v27 = vmax.f32 %v811_v20, %v812_v11 }
 0x223   :  { %v713_v28 = vadd.f32 %v707_v25, %v668_v7  ;;  %v836_v29 = vmax.f32 %v834_v23, %v835_v24 }
 0x224   :  { %v815_v31 = vmax.f32 %v813_v26, %v814_v27 }
 0x225   :  { %v758_v32 = vadd.f32 %v752_v30, %v713_v28  ;;  %v837_v33 = vadd.f32 %v1211_v22, %v836_v29 }
 0x226   :  { %v820_v36 = vadd.f32 %v1211_v22, %v815_v31 }
 0x227   :  { %v803_v38 = vadd.f32 %v797_v34, %v758_v32  ;;  %v838_v57 = vmax.f32 %v837_v33, 0.0 }
 0x228   :  { %v821_v39 = vmax.f32 %v820_v36, 0.0  ;;  %v901_v40 = vld [vmem:[#allocation3 + $0x10] sm:$0x3]  ;;  %v902_v41 = vld [vmem:[#allocation3 + $0x12] sm:$0x3] }
 0x229   :  { %808 = vst.msk [vmem:[#allocation3 + $0x18] sm:$0xff] %vm804_vm5, %v803_v38  ;;  %1178 = vmatmul.msk.f32.vlgmr.msra.gmra.mxu1 %vm804_vm5, %v838_v57  ;;  %v946_v42 = vld [vmem:[#allocation3 + $0x14] sm:$0x3]  ;;  %v947_v43 = vld [vmem:[#allocation3 + $0x16] sm:$0x3]  ;;  %v905_v48 = vmax.f32 %v901_v40, %v902_v41 }
 0x22a   :  { %1180 = vmatmul.msk.f32.vlgmr.msrb.gmra.mxu2 %vm804_vm5, %v821_v39  ;;  %v950_v53 = vmax.f32 %v946_v42, %v947_v43 }
 0x230   :  { %v903_v44 = vld [vmem:[#allocation3 + $0x18] sm:$0x3]  ;;  %v904_v45 = vld [vmem:[#allocation3 + $0x1a] sm:$0x3]  ;;  %v948_v46 = vld [vmem:[#allocation3 + $0x1c] sm:$0x3] }
 0x231   :  { %v906_v50 = vmax.f32 %v903_v44, %v904_v45  ;;  %v949_v52 = vld [vmem:[#allocation3 + $0x1e] sm:$0x3] }
 0x232   :  { %v951_v54 = vmax.f32 %v948_v46, %v949_v52 }
 0x233   :  { %v907_v55 = vmax.f32 %v905_v48, %v906_v50 }
 0x234   :  { %v952_v56 = vmax.f32 %v950_v53, %v951_v54 }
 0x235   :  { %v908_v59 = vadd.f32 %v1211_v22, %v907_v55 }
 0x236   :  { %v953_v61 = vadd.f32 %v1211_v22, %v952_v56 }
 0x237   :  { %v909_v63 = vmax.f32 %v908_v59, 0.0 }
 0x238   :  { %v954_v0 = vmax.f32 %v953_v61, 0.0 }
 0x239   :  { %1190 = vmatmul.msk.f32.vlgmr.msra.gmra.mxu3 %vm804_vm5, %v909_v63 }
 0x23a   :  { %1200 = vmatmul.msk.f32.vlgmr.msrb.gmra.mxu1 %vm804_vm5, %v954_v0 }
 0x2a6   :  { %v872_v4 = vpop.f32.mrf.mxu1 }
 0x2ad   :  { %v898_v6 = vpop.f32.mrf.mxu2 }
 0x2ae   :  { %v899_v35 = vadd.f32 %v898_v6, %v872_v4 }
 0x2b7   :  { %v987_v9 = vpop.f32.mrf.mxu1 }
 0x2bc   :  { %v942_v49 = vpop.f32.mrf.mxu3 }
 0x2bd   :  { %v945_v3 = vadd.f32 %v942_v49, %v899_v35 }
 0x2bf   :  { %v990_v10 = vadd.f32 %v987_v9, %v945_v3 }
 0x2c1   :  { %v995_v58 = vadd.f32 %v1212_v8, %v990_v10 }
 0x2c3   :  { %997 = vst.msk [vmem:[%s1828_s10] sm:$0x3] %vm996_vm6, %v995_v58  ;;  %v998_v47 = vmax.f32 %v995_v58, 0.0 }
 0x2c5   :  { %1202 = vmatmul.msk.f32.vlgmr.msra.gmra.mxu2 %vm1006_vm7, %v998_v47 }
 0x348   :  { %v1030_v51 = vpop.f32.mrf.mxu2 }
 0x349   :  { %v1031_v5 = vadd.f32 %v1213_v37, %v1030_v51 }
 0x34b   :  { %1034 = vst.msk [vmem:[#allocation4] sm:$0x3] %vm1033_vm8, %v1031_v5 }
 0x34c   :  { %1045 = dma.vmem_to_hbm [thread:$0]  %s1041_s13, 32, %s1043_s6, [#allocation5]  }
 0x34d   :  { %1238 = dma.done.wait [#allocation5], 32  }
 0x34e   :  { %1239 = vsyncadd [#allocation5], 4294967264 }
 0x34f   :  { %1054 = vsyncpa [#allocation5], 1 }

</bundles_post_ra>
